<compile_context>
chip_gen: v7x
topology: tpu7x:2x2x1
jax: 0.10.0
libtpu: 0.0.40
codegen_flags: <defaults>
</compile_context>

<pallas_src>
import functools
import math

import jax
import jax.numpy as jnp
from jax.experimental import pallas as pl
from jax.experimental.pallas import tpu as pltpu


def _round_up(n, m):
    return ((n + m - 1) // m) * m


def _pick_block_b(batch, d, c_padded, x_itemsize):
    # Keep double-buffered x/label tiles + f32 intermediates well inside the
    # v7x scoped-VMEM budget (32 MiB), leaving room for the resident weight.
    budget_bytes = 8 * 1024 * 1024
    per_row = 2 * d * x_itemsize + 2 * 4 + 6 * c_padded * 4
    tb = budget_bytes // max(per_row, 1)
    tb = max(8, (tb // 8) * 8)
    tb = min(tb, 1024)
    tb = min(tb, _round_up(batch, 8))
    return tb


def _linear_probe_loss_kernel(x_ref, lbl_ref, w_ref, b_ref, loss_ref, acc_ref,
                              *, num_classes, true_batch, block_b):
    g = pl.program_id(0)

    @pl.when(g == 0)
    def _init():
        acc_ref[0] = jnp.float32(0.0)

    x = x_ref[...]                                   # (TB, D)
    w = w_ref[...]                                   # (D, Cp)  resident
    b = b_ref[...]                                   # (1, Cp)  f32, resident
    lbl = lbl_ref[...]                               # (TB, 1)  int32

    # Linear layer on the MXU (f32 accumulate) + bias.
    logits = jnp.dot(x, w, preferred_element_type=jnp.float32) + b   # (TB, Cp)

    col = jax.lax.broadcasted_iota(jnp.int32, logits.shape, 1)
    valid_col = col < num_classes
    logits = jnp.where(valid_col, logits, jnp.float32(-1e30))

    # prediction = softmax(logits, dim=1); padded columns get exactly 0 mass.
    m1 = jnp.max(logits, axis=-1, keepdims=True)
    e1 = jnp.exp(logits - m1)
    inv_denom = pl.reciprocal(jnp.sum(e1, axis=-1, keepdims=True), approx=True)
    p = e1 * inv_denom                                                # (TB, Cp)

    # CrossEntropyLoss applies log_softmax to `p`.  p is in [0, 1] so no
    # max-shift is needed; padded columns are masked out of the sum.
    e2 = jnp.where(valid_col, jnp.exp(p), 0.0)
    lse = jnp.log(jnp.sum(e2, axis=-1, keepdims=True))                # (TB, 1)
    picked = jnp.sum(jnp.where(col == lbl, p, 0.0), axis=-1, keepdims=True)
    per_sample = lse - picked                     # = -log_softmax(p)[label]

    # Mask batch-padding rows and accumulate this tile's contribution.
    row = jax.lax.broadcasted_iota(jnp.int32, per_sample.shape, 0)
    valid_row = (g * block_b + row) < true_batch
    acc_ref[0] += jnp.sum(jnp.where(valid_row, per_sample, 0.0))

    @pl.when(g == pl.num_programs(0) - 1)
    def _finalize():
        loss_ref[0] = acc_ref[0] / jnp.float32(true_batch)


def linear_probing_loss(x, weight, bias, labels, *, block_b=None,
                        matmul_dtype=None):
    """LinearProbing(use_norm='none') forward loss.

    x:       (B, D) float features.
    weight:  (C, D) nn.Linear weight (torch layout).
    bias:    (C,)   nn.Linear bias.
    labels:  (B,)   int class indices (argmax of the one-hot target y).
    Returns a scalar f32 loss.
    """
    batch, d = x.shape
    num_classes = weight.shape[0]
    assert weight.shape == (num_classes, d)

    if matmul_dtype is not None:
        x = x.astype(matmul_dtype)
        weight = weight.astype(matmul_dtype)

    # Pad the class axis to a lane-dense multiple of 128 (masked in-kernel).
    c_padded = _round_up(num_classes, 128)
    w_t = weight.T                                                    # (D, C)
    if c_padded != num_classes:
        w_t = jnp.zeros((d, c_padded), w_t.dtype).at[:, :num_classes].set(w_t)
    b_row = bias.astype(jnp.float32).reshape(1, num_classes)
    if c_padded != num_classes:
        b_row = jnp.zeros((1, c_padded), jnp.float32).at[:, :num_classes].set(b_row)

    # Batch tile (multiple of 8); pad the batch to a whole number of tiles.
    if block_b is None:
        block_b = _pick_block_b(batch, d, c_padded, x.dtype.itemsize)
    block_b = max(8, (block_b // 8) * 8)
    num_tiles = -(-batch // block_b)
    batch_padded = num_tiles * block_b
    labels = labels.astype(jnp.int32)
    if batch_padded != batch:
        x = jnp.zeros((batch_padded, d), x.dtype).at[:batch].set(x)
        labels = jnp.zeros((batch_padded,), jnp.int32).at[:batch].set(labels)
    labels2d = labels.reshape(batch_padded, 1)

    kernel = functools.partial(
        _linear_probe_loss_kernel,
        num_classes=num_classes, true_batch=batch, block_b=block_b)

    out = pl.pallas_call(
        kernel,
        out_shape=jax.ShapeDtypeStruct((1,), jnp.float32),
        grid_spec=pltpu.PrefetchScalarGridSpec(
            num_scalar_prefetch=0,
            grid=(num_tiles,),
            in_specs=[
                pl.BlockSpec((block_b, d), lambda g: (g, 0)),      # x tile (pipelined)
                pl.BlockSpec((block_b, 1), lambda g: (g, 0)),      # labels tile
                pl.BlockSpec((d, c_padded), lambda g: (0, 0)),     # W resident
                pl.BlockSpec((1, c_padded), lambda g: (0, 0)),     # bias resident
            ],
            out_specs=pl.BlockSpec(memory_space=pltpu.MemorySpace.SMEM),
            scratch_shapes=[pltpu.SMEM((1,), jnp.float32)],
        ),
        compiler_params=pltpu.CompilerParams(
            # Serial SMEM loss accumulator -> the batch axis is a reduction.
            dimension_semantics=("arbitrary",),
            vmem_limit_bytes=32 * 1024 * 1024,
        ),
    )(x, labels2d, w_t, b_row)
    return out[0]


def _reference_loss(x, weight, bias, y_onehot):
    logits = x @ weight.T + bias
    p = jax.nn.softmax(logits, axis=1)
    logp = jax.nn.log_softmax(p, axis=1)
    return jnp.mean(-jnp.sum(y_onehot * logp, axis=1))


if __name__ == "__main__":
    # Small shapes consistent with the module: x (batch, input_dim), y (batch, y_dim).
    batch, input_dim, y_dim = 8, 32, 16

    key = jax.random.PRNGKey(0)
    kx, kw, kb, ky = jax.random.split(key, 4)

    x = jax.random.normal(kx, (batch, input_dim), dtype=jnp.float32)

    # Deterministic nn.Linear-style init: U(-1/sqrt(fan_in), 1/sqrt(fan_in))
    bound = 1.0 / math.sqrt(input_dim)
    weight = jax.random.uniform(kw, (y_dim, input_dim), jnp.float32, -bound, bound)
    bias = jax.random.uniform(kb, (y_dim,), jnp.float32, -bound, bound)

    labels = jax.random.randint(ky, (batch,), 0, y_dim)
    y_onehot = jax.nn.one_hot(labels, y_dim, dtype=jnp.float32)

    ref = _reference_loss(x, weight, bias, y_onehot)

    # f32 MXU path (tolerance covers the EUP approx reciprocal in the softmax).
    loss = linear_probing_loss(x, weight, bias, labels)
    jax.block_until_ready(loss)
    assert jnp.allclose(loss, ref, rtol=1e-3, atol=1e-3), (loss, ref)

    # bf16 MXU fast path (v6e/v7x), f32 accumulation; looser tolerance.
    loss_bf16 = linear_probing_loss(x, weight, bias, labels,
                                    matmul_dtype=jnp.bfloat16)
    jax.block_until_ready(loss_bf16)
    assert jnp.allclose(loss_bf16, ref, rtol=3e-2, atol=3e-2), (loss_bf16, ref)

    # TODO(synk): use_norm='batch'/'layer' branches not implemented (module default is 'none').
    print("KERNEL_OK")
</pallas_src>

<mosaic_0001>
module attributes {stable_mosaic.version = 11 : i64} {
  func.func @_linear_probe_loss_kernel(%arg0: i32, %arg1: memref<8x32xf32, #tpu.memory_space<vmem>>, %arg2: memref<8x1xi32, #tpu.memory_space<vmem>>, %arg3: memref<32x128xf32, #tpu.memory_space<vmem>>, %arg4: memref<1x128xf32, #tpu.memory_space<vmem>>, %arg5: memref<1xf32, #tpu.memory_space<smem>>, %arg6: memref<1xf32, #tpu.memory_space<smem>>) attributes {dimension_semantics = [#tpu.dimension_semantics<arbitrary>], iteration_bounds = array<i64: 1>, scalar_prefetch = 0 : i64, scratch_operands = 1 : i64, tpu.core_type = #tpu.core_type<tc>, window_params = [{transform_indices = @transform_0, window_bounds = array<i64: 8, 32>}, {transform_indices = @transform_1, window_bounds = array<i64: 8, 1>}, {pipeline_mode = #tpu.pipeline_mode<synchronous>, transform_indices = @transform_2, window_bounds = array<i64: 32, 128>}, {pipeline_mode = #tpu.pipeline_mode<synchronous>, transform_indices = @transform_3, window_bounds = array<i64: 1, 128>}, {transform_indices = @transform_4, window_bounds = array<i64: 1>}]} {
    %c0_i32 = arith.constant 0 : i32
    %0 = arith.cmpi eq, %arg0, %c0_i32 : i32
    %1 = arith.extui %0 : i1 to i32
    %c0_i32_0 = arith.constant 0 : i32
    %2 = arith.cmpi ne, %1, %c0_i32_0 : i32
    scf.if %2 {
      %cst_22 = arith.constant 0.000000e+00 : f32
      %c0_23 = arith.constant 0 : index
      %56 = memref.load %arg6[%c0_23] : memref<1xf32, #tpu.memory_space<smem>>
      memref.store %cst_22, %arg6[%c0_23] : memref<1xf32, #tpu.memory_space<smem>>
    } else {
    }
    %c0 = arith.constant 0 : index
    %c0_1 = arith.constant 0 : index
    %3 = vector.load %arg1[%c0, %c0_1] : memref<8x32xf32, #tpu.memory_space<vmem>>, vector<8x32xf32>
    %c0_2 = arith.constant 0 : index
    %c0_3 = arith.constant 0 : index
    %4 = vector.load %arg3[%c0_2, %c0_3] : memref<32x128xf32, #tpu.memory_space<vmem>>, vector<32x128xf32>
    %c0_4 = arith.constant 0 : index
    %c0_5 = arith.constant 0 : index
    %5 = vector.load %arg4[%c0_4, %c0_5] : memref<1x128xf32, #tpu.memory_space<vmem>>, vector<1x128xf32>
    %c0_6 = arith.constant 0 : index
    %c0_7 = arith.constant 0 : index
    %6 = vector.load %arg2[%c0_6, %c0_7] : memref<8x1xi32, #tpu.memory_space<vmem>>, vector<8x1xi32>
    %cst = arith.constant dense<0.000000e+00> : vector<8x128xf32>
    %7 = tpu.matmul %3, %4, %cst {dimension_numbers = #tpu.dot_dimension_numbers<[1], [0], [0], [1], [0, 0, 1, 1], [], []>} : vector<8x32xf32>, vector<32x128xf32>, vector<8x128xf32> -> vector<8x128xf32>
    %8 = vector.broadcast %5 : vector<1x128xf32> to vector<8x128xf32>
    %9 = arith.addf %7, %8 : vector<8x128xf32>
    %10 = tpu.iota {dimensions = array<i32: 1>} : vector<8x128xi32>
    %c16_i32 = arith.constant 16 : i32
    %11 = vector.broadcast %c16_i32 : i32 to vector<8x128xi32>
    %12 = arith.cmpi slt, %10, %11 : vector<8x128xi32>
    %cst_8 = arith.constant -1.000000e+30 : f32
    %13 = vector.broadcast %cst_8 : f32 to vector<8x128xf32>
    %14 = arith.select %12, %9, %13 : vector<8x128xi1>, vector<8x128xf32>
    %cst_9 = arith.constant dense<0xFF800000> : vector<8xf32>
    %15 = vector.multi_reduction <maximumf>, %14, %cst_9 [1] : vector<8x128xf32> to vector<8xf32>
    %16 = vector.shape_cast %15 : vector<8xf32> to vector<8x1xf32>
    %17 = vector.broadcast %16 : vector<8x1xf32> to vector<8x128xf32>
    %18 = arith.subf %14, %17 : vector<8x128xf32>
    %19 = math.exp %18 : vector<8x128xf32>
    %cst_10 = arith.constant dense<0.000000e+00> : vector<8xf32>
    %20 = vector.multi_reduction <add>, %19, %cst_10 [1] : vector<8x128xf32> to vector<8xf32>
    %21 = vector.shape_cast %20 : vector<8xf32> to vector<8x1xf32>
    %22 = tpu.reciprocal %21 {approx = true} : vector<8x1xf32> -> vector<8x1xf32>
    %23 = vector.broadcast %22 : vector<8x1xf32> to vector<8x128xf32>
    %24 = arith.mulf %19, %23 : vector<8x128xf32>
    %25 = math.exp %24 : vector<8x128xf32>
    %cst_11 = arith.constant 0.000000e+00 : f32
    %26 = vector.broadcast %cst_11 : f32 to vector<8x128xf32>
    %27 = arith.select %12, %25, %26 : vector<8x128xi1>, vector<8x128xf32>
    %cst_12 = arith.constant dense<0.000000e+00> : vector<8xf32>
    %28 = vector.multi_reduction <add>, %27, %cst_12 [1] : vector<8x128xf32> to vector<8xf32>
    %29 = vector.shape_cast %28 : vector<8xf32> to vector<8x1xf32>
    %30 = math.log %29 : vector<8x1xf32>
    %31 = vector.broadcast %6 : vector<8x1xi32> to vector<8x128xi32>
    %32 = arith.cmpi eq, %10, %31 : vector<8x128xi32>
    %cst_13 = arith.constant 0.000000e+00 : f32
    %33 = vector.broadcast %cst_13 : f32 to vector<8x128xf32>
    %34 = arith.select %32, %24, %33 : vector<8x128xi1>, vector<8x128xf32>
    %cst_14 = arith.constant dense<0.000000e+00> : vector<8xf32>
    %35 = vector.multi_reduction <add>, %34, %cst_14 [1] : vector<8x128xf32> to vector<8xf32>
    %36 = vector.shape_cast %35 : vector<8xf32> to vector<8x1xf32>
    %37 = arith.subf %30, %36 : vector<8x1xf32>
    %38 = tpu.iota {dimensions = array<i32: 0>} : vector<8x1xi32>
    %c8_i32 = arith.constant 8 : i32
    %39 = arith.muli %arg0, %c8_i32 : i32
    %40 = vector.broadcast %39 : i32 to vector<8x1xi32>
    %41 = arith.addi %40, %38 : vector<8x1xi32>
    %c8_i32_15 = arith.constant 8 : i32
    %42 = vector.broadcast %c8_i32_15 : i32 to vector<8x1xi32>
    %43 = arith.cmpi slt, %41, %42 : vector<8x1xi32>
    %c0_16 = arith.constant 0 : index
    %44 = memref.load %arg6[%c0_16] : memref<1xf32, #tpu.memory_space<smem>>
    %cst_17 = arith.constant 0.000000e+00 : f32
    %45 = vector.broadcast %cst_17 : f32 to vector<8x1xf32>
    %46 = arith.select %43, %37, %45 : vector<8x1xi1>, vector<8x1xf32>
    %47 = vector.shape_cast %46 : vector<8x1xf32> to vector<1x8x1xf32>
    %cst_18 = arith.constant dense<0.000000e+00> : vector<1xf32>
    %48 = vector.multi_reduction <add>, %47, %cst_18 [1, 2] : vector<1x8x1xf32> to vector<1xf32>
    %49 = vector.shape_cast %48 : vector<1xf32> to vector<1x1x1xf32>
    %50 = vector.extract %49[0, 0, 0] : f32 from vector<1x1x1xf32>
    %51 = arith.addf %44, %50 : f32
    %c0_19 = arith.constant 0 : index
    %52 = memref.load %arg6[%c0_19] : memref<1xf32, #tpu.memory_space<smem>>
    memref.store %51, %arg6[%c0_19] : memref<1xf32, #tpu.memory_space<smem>>
    %c0_i32_20 = arith.constant 0 : i32
    %53 = arith.cmpi eq, %arg0, %c0_i32_20 : i32
    %54 = arith.extui %53 : i1 to i32
    %c0_i32_21 = arith.constant 0 : i32
    %55 = arith.cmpi ne, %54, %c0_i32_21 : i32
    scf.if %55 {
      %c0_22 = arith.constant 0 : index
      %56 = memref.load %arg6[%c0_22] : memref<1xf32, #tpu.memory_space<smem>>
      %cst_23 = arith.constant 8.000000e+00 : f32
      %57 = arith.divf %56, %cst_23 : f32
      %c0_24 = arith.constant 0 : index
      %58 = memref.load %arg5[%c0_24] : memref<1xf32, #tpu.memory_space<smem>>
      memref.store %57, %arg5[%c0_24] : memref<1xf32, #tpu.memory_space<smem>>
    } else {
    }
    return
  }
  func.func @transform_0(%arg0: i32) -> (i32, i32) {
    %c0_i32 = arith.constant 0 : i32
    %c0_i32_0 = arith.constant 0 : i32
    return %arg0, %c0_i32 : i32, i32
  }
  func.func @transform_1(%arg0: i32) -> (i32, i32) {
    %c0_i32 = arith.constant 0 : i32
    %c0_i32_0 = arith.constant 0 : i32
    return %arg0, %c0_i32 : i32, i32
  }
  func.func @transform_2(%arg0: i32) -> (i32, i32) {
    %c0_i32 = arith.constant 0 : i32
    %c0_i32_0 = arith.constant 0 : i32
    %c0_i32_1 = arith.constant 0 : i32
    return %c0_i32, %c0_i32_0 : i32, i32
  }
  func.func @transform_3(%arg0: i32) -> (i32, i32) {
    %c0_i32 = arith.constant 0 : i32
    %c0_i32_0 = arith.constant 0 : i32
    %c0_i32_1 = arith.constant 0 : i32
    return %c0_i32, %c0_i32_0 : i32, i32
  }
  func.func @transform_4(%arg0: i32) -> i32 {
    %c0_i32 = arith.constant 0 : i32
    %c0_i32_0 = arith.constant 0 : i32
    return %c0_i32 : i32
  }
}

</mosaic_0001>

<bundles_post_ra>
// kernel: tpu_custom_call.1
= control target key start
LH: loop header
LB: loop body
LE: loop exit
PB: predicated region body
PF: predicated region fallthrough
CT: control target
= control target key end

     0   :  { %9 = vsyncpa [#allocation4], 0  ;;  %s346_s0 = inlined_call_operand.vmem [shape: f32[8,32], index: 0, kind: input, shape index: {}]   ;;  %s347_s1 = inlined_call_operand.vmem [shape: s32[8,1], index: 1, kind: input, shape index: {}]   ;;  %s348_s2 = inlined_call_operand.hbm [shape: f32[32,128], index: 2, kind: input, shape index: {}]   ;;  %s349_s3 = inlined_call_operand.vmem [shape: f32[1,128], index: 3, kind: input, shape index: {}]   ;;  %s350_s4 = inlined_call_operand.hbm [shape: f32[1], index: 4, kind: output, shape index: {}]  }
   0x1   :  { %10 = vsyncpa [#allocation5], 0  ;;  %s278_s15 = smov [#allocation3]   ;;  %s242_s19 = scalar_lea.hbm %s348_s2, 512 }
   0x2   :  { %s20_s16 = sshll.u32 %s278_s15, 4  ;;  %p243_p0 = scmp.ne.s32.totalorder %s348_s2, %s242_s19  ;;  %s21_s16 = int_to_ptr.vmem [resolvable:$true] %s20_s16 }
   0x3   :  { %p246_p1 = scmp.lt.u32.totalorder %s242_s19, %s348_s2 }
   0x5   :  { %p248_p2 = pnand %p246_p1, %p243_p0 }
   0x7   :  { %251 = shalt.err (!%p248_p2)
}
   0x8   :  { %s252_s24 = scalar_lea.vmem %s21_s16, 512  ;;  %p257_p4 = scmp.lt.s32.totalorder %s21_s16, %s21_s16 }
   0x9   :  { %p253_p3 = scmp.ne.s32.totalorder %s21_s16, %s252_s24  ;;  %p258_p5 = scmp.lt.s32.totalorder %s252_s24, %s252_s24 }
   0xb   :  { %p259_p6 = por %p258_p5, %p257_p4 }
   0xd   :  { %p260_p7 = pnand %p259_p6, %p253_p3 }
   0xf   :  { %263 = shalt.err (!%p260_p7)
}
  0x10   :  { %s279_s25 = smov 128   ;;  %s280_s26 = smov 8  }
  0x11   :  { %26 = dma.hbm_to_vmem [thread:$0]  %s348_s2, 512, %s21_s16, [#allocation4], %s279_s25, %s279_s25, %s280_s26  }
  0x12   :  { %274 = dma.done.wait [#allocation4], 512  }
  0x13   :  { %275 = vsyncadd [#allocation4], 4294966784  ;;  %v281_v0 = vmov 0.0|0.0   ;;  %vm282_vm0 = vmmov 0   ;;  %v283_v1 = vmov 0.0   ;;  %v39_v2 = vld [vmem:[#allocation3] sm:$0xff]  ;;  %v125_v9 = vlaneseq }
  0x14   :  { %216 = vmatprep.subr.bf16.mxu0 %v281_v0  ;;  %213 = vmatprep.mubr.msk.f32.mxu0 %vm282_vm0, %v283_v1  ;;  %v40_v3 = vld [vmem:[#allocation3 + $0x8] sm:$0xff]  ;;  %v41_v4 = vld [vmem:[#allocation3 + $0x10] sm:$0xff]  ;;  %v42_v6 = vld [vmem:[#allocation3 + $0x18] sm:$0xff]  ;;  %vm51_vm1 = vcmask 261120   ;;  %v284_v17 = vmov 0   ;;  %vm161_vm4 = vcmask 7168  }
  0x15   :  { %v217_v5 = vpack.c.bf16 %v40_v3, %v39_v2  ;;  %v220_v7 = vpack.c.bf16 %v42_v6, %v41_v4  ;;  %v38_v8 = vld [vmem:[%s346_s0] sm:$0xff]  ;;  %v126_v10 = vand.u32 127, %v125_v9  ;;  %232 = vset.pattern.permute.xlu1 %v284_v17  ;;  %233 = vset.pattern.permute.xlu0 %v284_v17  ;;  %s264_s9 = scalar_lea.hbm %s350_s4, 16 }
  0x16   :  { %v198_v11 = vld [vmem:[%s349_s3] ss:$0 sm:$0xff]  ;;  %p265_p8 = scmp.ne.s32.totalorder %s350_s4, %s264_s9  ;;  %p268_p9 = scmp.lt.u32.totalorder %s264_s9, %s350_s4 }
  0x17   :  { %218 = vmatpush3.bf16.msra.mxu0 %v217_v5  ;;  %vm127_vm2 = vcmp.lt.s32.totalorder %v126_v10, 16  ;;  %v44_v16 = vld [vmem:[%s347_s1] sm:$0xff] }
  0x18   :  { %219 = vmatprep.subr.bf16.mxu0 %v281_v0  ;;  %146 = vperm.xlu1 %232, %v44_v16   ;;  %p270_p10 = pnand %p268_p9, %p265_p8 }
  0x1b   :  { %221 = vmatpush3.bf16.msra.mxu0 %v220_v7 }
  0x1e   :  { %214 = vmatmul.mubr.msk.f32.vlgmr.msra.gmra.mrb[0].mxu0 %vm51_vm1, %v38_v8 }
  0x97   :  { %v147_v23 = vpop.permute.xlu1 %146 }
  0x98   :  { %vm148_vm3 = vcmp.eq.s32.totalorder %v126_v10, %v147_v23 }
  0xf1   :  { %v121_v12 = vpop.f32.mrb[0].mxu0 }
  0xf2   :  { %v122_v13 = vadd.f32 %v198_v11, %v121_v12  ;;  %v215_v14 = vpop.f32.mrb[1].mxu0 }
  0xf4   :  { %v128_v15 = vsel %vm127_vm2, %v122_v13, -1e+30 }
  0xf5   :  { %129 = vmax.xlane.f32.xlu0 %v128_v15 }
 0x182   :  { %v130_v18 = vpop.xlane.xlu0 %129 }
 0x183   :  { %v131_v19 = vsub.f32 %v128_v15, %v130_v18 }
 0x185   :  { %v132_v20 = vmul.f32 1.442695, %v131_v19 }
 0x187   :  { %234 = vpow2.f32 %v132_v20 }
 0x191   :  { %v235_v21 = vpop.eup %234 }
 0x192   :  { %134 = vadd.xlane.f32.xlu0 %v235_v21 }
 0x21f   :  { %v135_v22 = vpop.xlane.xlu0 %134 }
 0x220   :  { %236 = vrcp.f32 %v135_v22 }
 0x22a   :  { %v237_v24 = vpop.eup %236 }
 0x22b   :  { %v137_v25 = vmul.f32 %v237_v24, %v235_v21 }
 0x22d   :  { %v149_v26 = vsel %vm148_vm3, %v137_v25, 0.0  ;;  %v138_v27 = vmul.f32 1.442695, %v137_v25 }
 0x22e   :  { %150 = vadd.xlane.f32.xlu0 %v149_v26 }
 0x22f   :  { %238 = vpow2.f32 %v138_v27 }
 0x239   :  { %v239_v28 = vpop.eup %238 }
 0x23a   :  { %v140_v29 = vsel %vm127_vm2, %v239_v28, 0.0 }
 0x23b   :  { %141 = vadd.xlane.f32.xlu1 %v140_v29 }
 0x2bb   :  { %v151_v33 = vpop.xlane.xlu0 %150 }
 0x2c8   :  { %v142_v30 = vpop.xlane.xlu1 %141 }
 0x2c9   :  { %240 = vlog2.f32 %v142_v30 }
 0x2d3   :  { %v241_v31 = vpop.eup %240 }
 0x2d4   :  { %v144_v32 = vmul.f32 0.6931472, %v241_v31 }
 0x2d6   :  { %v152_v34 = vsub.f32 %v144_v32, %v151_v33 }
 0x2d8   :  { %v162_v35 = vsel %vm161_vm4, %v152_v34, 0.0 }
 0x2d9   :  { %163 = vadd.xlane.f32.xlu0 %v162_v35 }
 0x366   :  { %v164_v36 = vpop.xlane.xlu0 %163 }
 0x367   :  { %v165_v37 = vrot.slane %v164_v36, 4 }
 0x369   :  { %v166_v38 = vadd.f32 %v165_v37, %v164_v36 }
 0x36b   :  { %v167_v39 = vrot.slane %v166_v38, 2 }
 0x36d   :  { %v168_v40 = vadd.f32 %v167_v39, %v166_v38 }
 0x36f   :  { %v169_v41 = vrot.slane %v168_v40, 1 }
 0x371   :  { %v170_v42 = vadd.f32 %v169_v41, %v168_v40 }
 0x373   :  { %222 = vpush %v170_v42 }
 0x3a4   :  { %s223_s0 = spop %222 }
 0x3a5   :  { %s181_s1 = smul.f32 0.125, %s223_s0 }
 0x3a7   :  { %183 = sst [smem:[#allocation6]] %s181_s1 }
 0x3a8   :  { %273 = shalt.err (!%p270_p10)
}
 0x3a9   :  { %s285_s14 = smov [#allocation6]  }
 0x3aa   :  { %191 = dma.smem_to_hbm %s285_s14, 16, %s350_s4, [#allocation5]  }
 0x3ab   :  { %276 = dma.done.wait [#allocation5], 16  }
 0x3ac   :  { %277 = vsyncadd [#allocation5], 4294967280 }
 0x3ad   :  { %195 = sfence }
 0x3ae   :  { %196 = vsyncpa [#allocation4], 1 }
 0x3af   :  { %197 = vsyncpa [#allocation5], 1 }

</bundles_post_ra>
